<compile_context>
chip_gen: v7x
topology: tpu7x:2x2x1
jax: 0.10.0
libtpu: 0.0.40
codegen_flags: <defaults>
</compile_context>

<pallas_src>
import jax
import jax.numpy as jnp
from jax.experimental import pallas as pl
from jax.experimental.pallas import tpu as pltpu

INPUT_SIZE = 4
HIDDEN_SIZE = 10
OUTPUT_SIZE = 1

# Scoped-VMEM request: > v5e's 16 MiB default (needed for big tiles), and
# comfortably inside v7x's 64 MiB physical VMEM per TensorCore.
_VMEM_LIMIT_BYTES = 48 * 1024 * 1024

# Default lane tile.  x tile (4, 65536) f32 = 1 MiB, out tile 0.25 MiB
# (double-buffered ~2.5 MiB); the unrolled VPU compute keeps a few live
# (10, TB) f32 intermediates (~2.5 MiB each), so total stays well under the
# 48 MiB scoped limit on every generation while amortizing the ~0.35 us
# per-grid-step overhead to a few percent.
_DEFAULT_BATCH_TILE = 65536


def mlp_kernel(xT_ref, w1_ref, b1_ref, w2c_ref, b2_ref, oT_ref):
    # xT:  (IN, TB)  f32, batch on the lane axis (lane-dense DMA)
    # w1:  (HID, IN) f32  (PyTorch layout), VMEM-resident
    # b1:  (HID, 1)  f32, VMEM-resident
    # w2c: (HID, 1)  f32  (= W2 column form), VMEM-resident
    # b2:  (1,)      f32 scalar in SMEM
    # oT:  (OUT, TB) f32, lane-dense output
    xT = xT_ref[...]
    w1 = w1_ref[...]
    tb = xT.shape[1]

    # Layer 1: h = relu(W1 @ x + b1) as 4 unrolled VPU outer-product FMAs
    # (broadcast (HID,1) over lanes x broadcast (1,TB) over sublanes).
    h = jnp.broadcast_to(b1_ref[...], (HIDDEN_SIZE, tb))
    for k in range(INPUT_SIZE):                      # static unroll, 4 steps
        h = h + w1[:, k:k + 1] * xT[k:k + 1, :]
    h = jnp.maximum(h, 0.0)                          # ReLU on the VPU

    # Layer 2: y = W2 @ h + b2 as a weighted sublane reduction (XLU) plus the
    # scalar bias read from SMEM.
    y = jnp.sum(h * w2c_ref[...], axis=0, keepdims=True) + b2_ref[0]
    oT_ref[...] = y.astype(oT_ref.dtype)


def mlp_forward_feature_major(xT, w1, b1, w2, b2, *,
                              batch_tile=_DEFAULT_BATCH_TILE):
    """Optimized entry point.  xT: (INPUT_SIZE, B) f32 — batch on the lane axis.

    Weights in PyTorch layout: w1 (HID, IN), b1 (HID,), w2 (OUT, HID), b2 (OUT,).
    Returns (B, OUTPUT_SIZE).
    """
    in_dim, B = xT.shape
    assert in_dim == INPUT_SIZE
    xT = xT.astype(jnp.float32)
    w1c = w1.astype(jnp.float32)
    b1c = b1.reshape(HIDDEN_SIZE, 1).astype(jnp.float32)
    w2c = (w2.reshape(OUTPUT_SIZE, HIDDEN_SIZE).T
             .reshape(HIDDEN_SIZE, 1).astype(jnp.float32))
    b2c = b2.reshape(OUTPUT_SIZE).astype(jnp.float32)

    vmem = pl.BlockSpec(memory_space=pltpu.MemorySpace.VMEM)
    smem = pl.BlockSpec(memory_space=pltpu.MemorySpace.SMEM)

    if B <= batch_tile:
        # Single invocation, no grid: all operands resident in VMEM, b2 in SMEM.
        yT = pl.pallas_call(
            mlp_kernel,
            out_shape=jax.ShapeDtypeStruct((OUTPUT_SIZE, B), jnp.float32),
            in_specs=[vmem, vmem, vmem, vmem, smem],
            out_specs=vmem,
            compiler_params=pltpu.CompilerParams(
                vmem_limit_bytes=_VMEM_LIMIT_BYTES),
        )(xT, w1c, b1c, w2c, b2c)
        return yT.T                                  # layout-identical reshape

    # Large batch: 1-D grid over lane-aligned batch tiles.  No padding: the
    # ragged last tile is handled by Pallas's boundary masking (partial loads,
    # partial write-back).  Weights stay VMEM-resident via constant index_maps.
    n_tiles = pl.cdiv(B, batch_tile)
    yT = pl.pallas_call(
        mlp_kernel,
        out_shape=jax.ShapeDtypeStruct((OUTPUT_SIZE, B), jnp.float32),
        grid=(n_tiles,),
        in_specs=[
            pl.BlockSpec((INPUT_SIZE, batch_tile), lambda i: (0, i)),    # x tile
            pl.BlockSpec((HIDDEN_SIZE, INPUT_SIZE), lambda i: (0, 0)),   # w1 resident
            pl.BlockSpec((HIDDEN_SIZE, 1), lambda i: (0, 0)),            # b1 resident
            pl.BlockSpec((HIDDEN_SIZE, 1), lambda i: (0, 0)),            # w2 column resident
            smem,                                                        # b2 scalar
        ],
        out_specs=pl.BlockSpec((OUTPUT_SIZE, batch_tile), lambda i: (0, i)),
        compiler_params=pltpu.CompilerParams(
            # "parallel" lets megacore shard the batch axis; CORE_PARALLEL is a
            # further v7x-only option but "parallel" is safe on all generations.
            dimension_semantics=("parallel",),
            vmem_limit_bytes=_VMEM_LIMIT_BYTES),
    )(xT, w1c, b1c, w2c, b2c)
    return yT.T                                      # (B, OUT), free reshape


def mlp_forward(x, w1, b1, w2, b2, *, batch_tile=_DEFAULT_BATCH_TILE):
    """Module-faithful entry point: x is (B, INPUT_SIZE), like the PyTorch model.

    Note: this performs one transpose of x outside the kernel.  For the
    zero-copy hot path, feed data feature-major via mlp_forward_feature_major.
    """
    return mlp_forward_feature_major(x.T, w1, b1, w2, b2, batch_tile=batch_tile)


def init_params(key):
    # Deterministic init mimicking nn.Linear's U(-1/sqrt(fan_in), 1/sqrt(fan_in)),
    # stored in PyTorch layout (out_features, in_features).
    k1, k2, k3, k4 = jax.random.split(key, 4)
    bound1 = 1.0 / (INPUT_SIZE ** 0.5)
    bound2 = 1.0 / (HIDDEN_SIZE ** 0.5)
    w1 = jax.random.uniform(k1, (HIDDEN_SIZE, INPUT_SIZE), jnp.float32,
                            minval=-bound1, maxval=bound1)
    b1 = jax.random.uniform(k2, (HIDDEN_SIZE,), jnp.float32,
                            minval=-bound1, maxval=bound1)
    w2 = jax.random.uniform(k3, (OUTPUT_SIZE, HIDDEN_SIZE), jnp.float32,
                            minval=-bound2, maxval=bound2)
    b2 = jax.random.uniform(k4, (OUTPUT_SIZE,), jnp.float32,
                            minval=-bound2, maxval=bound2)
    return w1, b1, w2, b2


def reference_forward(x, w1, b1, w2, b2):
    h = jnp.maximum(x @ w1.T + b1, 0.0)
    return h @ w2.T + b2


if __name__ == "__main__":
    key = jax.random.PRNGKey(0)
    kx, kp, kx2 = jax.random.split(key, 3)

    w1, b1, w2, b2 = init_params(kp)

    # Small batch, module-faithful (B, IN) input -> single no-grid invocation.
    B_small = 8
    x_small = jax.random.normal(kx, (B_small, INPUT_SIZE), jnp.float32)
    out_small = jax.block_until_ready(mlp_forward(x_small, w1, b1, w2, b2))
    ref_small = reference_forward(x_small, w1, b1, w2, b2)
    assert out_small.shape == (B_small, OUTPUT_SIZE)
    assert jnp.allclose(out_small, ref_small, atol=1e-5, rtol=1e-5)

    # Larger batch generated directly feature-major (no out-of-kernel transpose),
    # with a batch that is NOT a tile multiple to exercise the grid path and the
    # masked ragged-tail write-back (small tile override just for the test).
    B_big = 1000
    xT_big = jax.random.normal(kx2, (INPUT_SIZE, B_big), jnp.float32)
    out_big = jax.block_until_ready(
        mlp_forward_feature_major(xT_big, w1, b1, w2, b2, batch_tile=256))
    ref_big = reference_forward(xT_big.T, w1, b1, w2, b2)
    assert out_big.shape == (B_big, OUTPUT_SIZE)
    assert jnp.allclose(out_big, ref_big, atol=1e-5, rtol=1e-5)

    print("KERNEL_OK")
</pallas_src>

<mosaic_0001>
module attributes {stable_mosaic.version = 11 : i64} {
  func.func @mlp_kernel(%arg0: memref<4x8xf32, #tpu.memory_space<vmem>>, %arg1: memref<10x4xf32, #tpu.memory_space<vmem>>, %arg2: memref<10x1xf32, #tpu.memory_space<vmem>>, %arg3: memref<10x1xf32, #tpu.memory_space<vmem>>, %arg4: memref<1xf32, #tpu.memory_space<smem>>, %arg5: memref<1x8xf32, #tpu.memory_space<vmem>>) attributes {dimension_semantics = [], scalar_prefetch = 0 : i64, scratch_operands = 0 : i64, tpu.core_type = #tpu.core_type<tc>} {
    %c0 = arith.constant 0 : index
    %c0_0 = arith.constant 0 : index
    %0 = vector.load %arg0[%c0, %c0_0] : memref<4x8xf32, #tpu.memory_space<vmem>>, vector<4x8xf32>
    %c0_1 = arith.constant 0 : index
    %c0_2 = arith.constant 0 : index
    %1 = vector.load %arg1[%c0_1, %c0_2] : memref<10x4xf32, #tpu.memory_space<vmem>>, vector<10x4xf32>
    %c0_3 = arith.constant 0 : index
    %c0_4 = arith.constant 0 : index
    %2 = vector.load %arg2[%c0_3, %c0_4] : memref<10x1xf32, #tpu.memory_space<vmem>>, vector<10x1xf32>
    %3 = vector.shape_cast %2 : vector<10x1xf32> to vector<10x1xf32>
    %4 = vector.broadcast %3 : vector<10x1xf32> to vector<10x8xf32>
    %5 = vector.extract_strided_slice %1 {offsets = [0, 0], sizes = [10, 1], strides = [1, 1]} : vector<10x4xf32> to vector<10x1xf32>
    %6 = vector.extract_strided_slice %0 {offsets = [0, 0], sizes = [1, 8], strides = [1, 1]} : vector<4x8xf32> to vector<1x8xf32>
    %7 = vector.broadcast %5 : vector<10x1xf32> to vector<10x8xf32>
    %8 = vector.broadcast %6 : vector<1x8xf32> to vector<10x8xf32>
    %9 = arith.mulf %7, %8 : vector<10x8xf32>
    %10 = arith.addf %4, %9 : vector<10x8xf32>
    %11 = vector.extract_strided_slice %1 {offsets = [0, 1], sizes = [10, 1], strides = [1, 1]} : vector<10x4xf32> to vector<10x1xf32>
    %12 = vector.extract_strided_slice %0 {offsets = [1, 0], sizes = [1, 8], strides = [1, 1]} : vector<4x8xf32> to vector<1x8xf32>
    %13 = vector.broadcast %11 : vector<10x1xf32> to vector<10x8xf32>
    %14 = vector.broadcast %12 : vector<1x8xf32> to vector<10x8xf32>
    %15 = arith.mulf %13, %14 : vector<10x8xf32>
    %16 = arith.addf %10, %15 : vector<10x8xf32>
    %17 = vector.extract_strided_slice %1 {offsets = [0, 2], sizes = [10, 1], strides = [1, 1]} : vector<10x4xf32> to vector<10x1xf32>
    %18 = vector.extract_strided_slice %0 {offsets = [2, 0], sizes = [1, 8], strides = [1, 1]} : vector<4x8xf32> to vector<1x8xf32>
    %19 = vector.broadcast %17 : vector<10x1xf32> to vector<10x8xf32>
    %20 = vector.broadcast %18 : vector<1x8xf32> to vector<10x8xf32>
    %21 = arith.mulf %19, %20 : vector<10x8xf32>
    %22 = arith.addf %16, %21 : vector<10x8xf32>
    %23 = vector.extract_strided_slice %1 {offsets = [0, 3], sizes = [10, 1], strides = [1, 1]} : vector<10x4xf32> to vector<10x1xf32>
    %24 = vector.extract_strided_slice %0 {offsets = [3, 0], sizes = [1, 8], strides = [1, 1]} : vector<4x8xf32> to vector<1x8xf32>
    %25 = vector.broadcast %23 : vector<10x1xf32> to vector<10x8xf32>
    %26 = vector.broadcast %24 : vector<1x8xf32> to vector<10x8xf32>
    %27 = arith.mulf %25, %26 : vector<10x8xf32>
    %28 = arith.addf %22, %27 : vector<10x8xf32>
    %cst = arith.constant 0.000000e+00 : f32
    %29 = vector.broadcast %cst : f32 to vector<10x8xf32>
    %30 = arith.maximumf %28, %29 : vector<10x8xf32>
    %c0_5 = arith.constant 0 : index
    %c0_6 = arith.constant 0 : index
    %31 = vector.load %arg3[%c0_5, %c0_6] : memref<10x1xf32, #tpu.memory_space<vmem>>, vector<10x1xf32>
    %32 = vector.broadcast %31 : vector<10x1xf32> to vector<10x8xf32>
    %33 = arith.mulf %30, %32 : vector<10x8xf32>
    %cst_7 = arith.constant dense<0.000000e+00> : vector<8xf32>
    %34 = vector.multi_reduction <add>, %33, %cst_7 [0] : vector<10x8xf32> to vector<8xf32>
    %35 = vector.shape_cast %34 : vector<8xf32> to vector<1x8xf32>
    %c0_8 = arith.constant 0 : index
    %36 = memref.load %arg4[%c0_8] : memref<1xf32, #tpu.memory_space<smem>>
    %37 = vector.broadcast %36 : f32 to vector<1x8xf32>
    %38 = arith.addf %35, %37 : vector<1x8xf32>
    %c0_9 = arith.constant 0 : index
    %c0_10 = arith.constant 0 : index
    %39 = vector.load %arg5[%c0_9, %c0_10] : memref<1x8xf32, #tpu.memory_space<vmem>>, vector<1x8xf32>
    tpu.vector_store %arg5[%c0_9, %c0_10], %38 {strides = array<i32>} : memref<1x8xf32, #tpu.memory_space<vmem>>, vector<1x8xf32>,
    return
  }
}

</mosaic_0001>

<bundles_post_ra>
// kernel: tpu_custom_call.1
= control target key start
LH: loop header
LB: loop body
LE: loop exit
PB: predicated region body
PF: predicated region fallthrough
CT: control target
= control target key end

     0   :  { %v187_v2 = vmov 0   ;;  %s258_s0 = inlined_call_operand.vmem [shape: f32[4,8], index: 0, kind: input, shape index: {}]   ;;  %s259_s1 = inlined_call_operand.vmem [shape: f32[10,4], index: 1, kind: input, shape index: {}]   ;;  %s260_s2 = inlined_call_operand.vmem [shape: f32[10,1], index: 2, kind: input, shape index: {}]   ;;  %s261_s3 = inlined_call_operand.vmem [shape: f32[10,1], index: 3, kind: input, shape index: {}]   ;;  %s262_s4 = inlined_call_operand.<no memory space> [shape: f32[1], index: 4, kind: input, shape index: {}]   ;;  %s263_s5 = inlined_call_operand.hbm [shape: f32[1,8], index: 5, kind: output, shape index: {}]  }
   0x1   :  { %v25_v0 = vld [vmem:[%s260_s2] sm:$0xff]  ;;  %155 = vset.pattern.permute.xlu1 %v187_v2  ;;  %154 = vset.pattern.permute.xlu0 %v187_v2  ;;  %v26_v3 = vld [vmem:[%s260_s2 + $0x8] sm:$0x3] }
   0x2   :  { %v23_v1 = vld [vmem:[%s259_s1] sm:$0xff]  ;;  %29 = vperm.xlu1 %155, %v25_v0   ;;  %v24_v4 = vld [vmem:[%s259_s1 + $0x8] sm:$0x3] }
   0x3   :  { %39 = vperm.xlu0 %154, %v23_v1  }
   0x4   :  { %11 = vsyncpa [#allocation4], 0  ;;  %v188_v5 = vmov 1   ;;  %v189_v6 = vmov 2   ;;  %v105_v7 = vld [vmem:[%s261_s3] sm:$0xff]  ;;  %v190_v8 = vmov 3   ;;  %v47_v10 = vlaneseq }
   0x5   :  { %v106_v9 = vld [vmem:[%s261_s3 + $0x8] sm:$0x3]  ;;  %v22_v16 = vld [vmem:[%s258_s0] sm:$0xf]  ;;  %vm119_vm0 = vcmask 64512   ;;  %vm121_vm1 = vcmask 58368   ;;  %v131_v61 = vstv %s262_s4 }
   0x6   :  { %34 = vperm.xlu1 %155, %v26_v3   ;;  %v48_v12 = vshrl.u32 %v47_v10, 7  ;;  %s191_s30 = smov [#allocation3]   ;;  %vm133_vm2 = vcmask 57344  }
   0x7   :  { %44 = vperm.xlu0 %154, %v24_v4   ;;  %s141_s6 = sshll.u32 %s191_s30, 4  ;;  %s142_s6 = int_to_ptr.vmem [resolvable:$true] %s141_s6 }
   0x8   :  { %v49_v14 = vsub.s32 0, %v48_v12  ;;  %v65_v18 = vsub.s32 1, %v48_v12  ;;  %v81_v20 = vsub.s32 2, %v48_v12  ;;  %v97_v26 = vsub.s32 3, %v48_v12  ;;  %s163_s7 = scalar_lea.vmem %s142_s6, 16  ;;  %s167_s8 = scalar_lea.vmem %s142_s6, 32 }
   0x9   :  { %p164_p0 = scmp.ne.s32.totalorder %s142_s6, %s163_s7  ;;  %p168_p1 = scmp.lt.s32.totalorder %s142_s6, %s142_s6 }
   0xa   :  { %157 = vset.pattern.permute.xlu1 %v188_v5  ;;  %v50_v19 = vrot.slane %v22_v16, %v49_v14  ;;  %v66_v22 = vrot.slane %v22_v16, %v65_v18  ;;  %v82_v25 = vrot.slane %v22_v16, %v81_v20  ;;  %v98_v32 = vrot.slane %v22_v16, %v97_v26  ;;  %p169_p2 = scmp.lt.s32.totalorder %s167_s8, %s163_s7 }
   0xb   :  { %156 = vset.pattern.permute.xlu0 %v188_v5  ;;  %60 = vperm.xlu1 %157, %v24_v4  }
   0xc   :  { %56 = vperm.xlu0 %156, %v23_v1   ;;  %p170_p3 = por %p169_p2, %p168_p1 }
   0xe   :  { %p171_p4 = pnand %p170_p3, %p164_p0 }
   0xf   :  { %158 = vset.pattern.permute.xlu1 %v189_v6 }
  0x10   :  { %159 = vset.pattern.permute.xlu0 %v189_v6  ;;  %72 = vperm.xlu1 %158, %v23_v1  }
  0x11   :  { %76 = vperm.xlu0 %159, %v24_v4  }
  0x14   :  { %160 = vset.pattern.permute.xlu1 %v190_v8 }
  0x15   :  { %161 = vset.pattern.permute.xlu0 %v187_v2  ;;  %88 = vperm.xlu1 %160, %v23_v1  }
  0x16   :  { %109 = vperm.xlu0 %161, %v105_v7  }
  0x19   :  { %92 = vperm.xlu1 %160, %v24_v4  }
  0x1d   :  { %162 = vset.pattern.permute.xlu1 %v187_v2 }
  0x1e   :  { %114 = vperm.xlu1 %162, %v106_v9  }
  0x81   :  { %v30_v11 = vpop.permute.xlu1 %29 }
  0x82   :  { %v40_v13 = vpop.permute.xlu0 %39 }
  0x83   :  { %v51_v24 = vmul.f32 %v50_v19, %v40_v13 }
  0x85   :  { %v35_v15 = vpop.permute.xlu1 %34  ;;  %v53_v29 = vadd.f32 %v51_v24, %v30_v11 }
  0x86   :  { %v45_v17 = vpop.permute.xlu0 %44 }
  0x87   :  { %v52_v30 = vmul.f32 %v50_v19, %v45_v17 }
  0x89   :  { %v54_v37 = vadd.f32 %v52_v30, %v35_v15 }
  0x8a   :  { %v61_v21 = vpop.permute.xlu1 %60 }
  0x8b   :  { %v57_v23 = vpop.permute.xlu0 %56  ;;  %v68_v34 = vmul.f32 %v66_v22, %v61_v21 }
  0x8c   :  { %v67_v27 = vmul.f32 %v66_v22, %v57_v23 }
  0x8d   :  { %v70_v41 = vadd.f32 %v68_v34, %v54_v37 }
  0x8e   :  { %v69_v35 = vadd.f32 %v67_v27, %v53_v29 }
  0x8f   :  { %v73_v28 = vpop.permute.xlu1 %72 }
  0x90   :  { %v83_v31 = vmul.f32 %v82_v25, %v73_v28  ;;  %v77_v33 = vpop.permute.xlu0 %76 }
  0x91   :  { %v84_v39 = vmul.f32 %v82_v25, %v77_v33 }
  0x92   :  { %v85_v38 = vadd.f32 %v83_v31, %v69_v35 }
  0x93   :  { %v86_v44 = vadd.f32 %v84_v39, %v70_v41 }
  0x94   :  { %v89_v36 = vpop.permute.xlu1 %88 }
  0x95   :  { %v99_v40 = vmul.f32 %v98_v32, %v89_v36  ;;  %v110_v47 = vpop.permute.xlu0 %109 }
  0x97   :  { %v101_v42 = vadd.f32 %v99_v40, %v85_v38 }
  0x98   :  { %v93_v43 = vpop.permute.xlu1 %92 }
  0x99   :  { %v100_v45 = vmul.f32 %v98_v32, %v93_v43  ;;  %v103_v46 = vmax.f32 %v101_v42, 0.0 }
  0x9b   :  { %v102_v48 = vadd.f32 %v100_v45, %v86_v44  ;;  %v117_v49 = vmul.f32 %v110_v47, %v103_v46 }
  0x9d   :  { %v115_v50 = vpop.permute.xlu1 %114  ;;  %v104_v51 = vmax.f32 %v102_v48, 0.0  ;;  %v120_v53 = vsel %vm119_vm0, %v117_v49, 0.0 }
  0x9f   :  { %v118_v52 = vmul.f32 %v115_v50, %v104_v51 }
  0xa1   :  { %v122_v54 = vsel %vm121_vm1, %v118_v52, 0.0 }
  0xa2   :  { %v123_v55 = vadd.f32 %v122_v54, %v120_v53 }
  0xa4   :  { %v124_v56 = vrot.slane %v123_v55, 4 }
  0xa6   :  { %v125_v57 = vadd.f32 %v124_v56, %v123_v55 }
  0xa8   :  { %v126_v58 = vrot.slane %v125_v57, 2 }
  0xaa   :  { %v127_v59 = vadd.f32 %v126_v58, %v125_v57 }
  0xac   :  { %v128_v60 = vrot.slane %v127_v59, 1 }
  0xae   :  { %v129_v62 = vadd.f32 %v128_v60, %v127_v59 }
  0xb0   :  { %v132_v63 = vadd.f32 %v131_v61, %v129_v62 }
  0xb2   :  { %134 = vst.msk [vmem:[#allocation3] sm:$0x1] %vm133_vm2, %v132_v63 }
  0xb3   :  { %174 = shalt.err (!%p171_p4)
}
  0xb4   :  { %s175_s11 = scalar_lea.hbm %s263_s5, 16 }
  0xb5   :  { %p176_p5 = scmp.ne.s32.totalorder %s263_s5, %s175_s11  ;;  %p179_p6 = scmp.lt.u32.totalorder %s175_s11, %s263_s5 }
  0xb7   :  { %p181_p7 = pnand %p179_p6, %p176_p5 }
  0xb9   :  { %184 = shalt.err (!%p181_p7)
}
  0xba   :  { %144 = dma.vmem_to_hbm [thread:$0]  %s142_s6, 16, %s263_s5, [#allocation4]  }
  0xbb   :  { %185 = dma.done.wait [#allocation4], 16  }
  0xbc   :  { %186 = vsyncadd [#allocation4], 4294967280 }
  0xbd   :  { %148 = vsyncpa [#allocation4], 1 }

</bundles_post_ra>
